<compile_context>
chip_gen: v5e
topology: v5e:2x2
jax: 0.10.0
libtpu: 0.0.40
codegen_flags: <defaults>
</compile_context>

<pallas_src>
import functools

import jax
import jax.numpy as jnp
from jax.experimental import pallas as pl
from jax.experimental.pallas import tpu as pltpu


def _round_up(x, m):
    return ((x + m - 1) // m) * m


# ----------------------------------------------------------------------------
# Fused kernel: graph pooling (accumulated over node tiles) + full MLP stack.
# ----------------------------------------------------------------------------
def _fused_mlp_kernel(*refs, num_linear, mean, n_nodes):
    """Ref layout (positional):
      refs[0]                     batch ids tile, (1, tn) int32
      refs[1]                     node-feature tile, (tn, F) f32
      refs[2 : 2 + 2*num_linear]  (w, b) pairs; w bf16 [Din, Dout], b f32 [1, Dout]
      refs[2 + 2*num_linear]      output, (B_pad, Dout_pad) f32 (grid-resident)
      refs[3 + 2*num_linear]      pooled-sum scratch, (B_pad, F) f32
      refs[4 + 2*num_linear]      per-graph node-count scratch, (B_pad, 1) f32
    """
    batch_ref, x_ref = refs[0], refs[1]
    wb_refs = refs[2:2 + 2 * num_linear]
    out_ref = refs[2 + 2 * num_linear]
    acc_ref = refs[3 + 2 * num_linear]
    cnt_ref = refs[4 + 2 * num_linear]

    step = pl.program_id(0)
    n_steps = pl.num_programs(0)
    b_pad = acc_ref.shape[0]
    tn = x_ref.shape[0]

    @pl.when(step == 0)
    def _init():
        acc_ref[...] = jnp.zeros_like(acc_ref)
        cnt_ref[...] = jnp.zeros_like(cnt_ref)

    # --- pooling: one node tile as a one-hot matmul on the MXU --------------
    col0 = step * tn
    # Mask for the ragged last tile (block may extend past N): both the batch
    # ids (sentinel) and the x rows (zeroed) are masked, so out-of-bounds
    # garbage (even NaN/Inf) contributes exactly 0 to the accumulator/counts.
    col_idx = jax.lax.broadcasted_iota(jnp.int32, (1, tn), 1) + col0     # (1, tn)
    col_valid = col_idx < n_nodes
    ids = jnp.where(col_valid, batch_ref[...], b_pad)                    # sentinel
    row_ids = jax.lax.broadcasted_iota(jnp.int32, (b_pad, tn), 0)        # (B_pad, tn)
    onehot = (row_ids == ids).astype(jnp.bfloat16)                       # exact 0/1

    node_idx = jax.lax.broadcasted_iota(jnp.int32, (tn, 1), 0) + col0    # (tn, 1)
    x_bf = jnp.where(node_idx < n_nodes, x_ref[...], 0.0).astype(jnp.bfloat16)

    acc_ref[...] += jnp.dot(onehot, x_bf,                                # bf16 x bf16
                            preferred_element_type=jnp.float32)          # f32 acc
    if mean:
        # Per-graph node counts from the same MXU path (no VPU cast / XLU sum).
        cnt_ref[...] += jnp.dot(onehot, jnp.ones((tn, 1), jnp.bfloat16),
                                preferred_element_type=jnp.float32)

    # --- finalize: run the whole Linear/ReLU stack on the pooled features ---
    @pl.when(step == n_steps - 1)
    def _finalize():
        h = acc_ref[...]                                                 # (B_pad, F)
        if mean:
            h = h * pl.reciprocal(jnp.maximum(cnt_ref[...], 1.0), approx=True)
        for li in range(num_linear):
            w_ref = wb_refs[2 * li]
            b_ref = wb_refs[2 * li + 1]
            y = jnp.dot(h.astype(jnp.bfloat16), w_ref[...],
                        preferred_element_type=jnp.float32)
            y = y + b_ref[...]                                           # (1, Dout) f32
            if li < num_linear - 1:                                      # hidden layers
                y = jnp.maximum(y, 0.0)
            h = y
        out_ref[...] = h                                                 # lane-dense


def _auto_node_tile(n, f, weight_bytes, b_pad, d_out_pad, budget_bytes=40 << 20):
    """Pick the node tile from a VMEM budget (safe even on v7x's 64 MiB)."""
    fixed = (weight_bytes                     # resident bf16 weights (Buffered(1))
             + b_pad * f * 4                  # pooled-sum accumulator
             + b_pad * 128 * 4                # count scratch (lane-padded)
             + 2 * b_pad * d_out_pad * 4      # output block
             + (2 << 20))                     # slack for compiler scratch
    avail = max(budget_bytes - fixed, 4 << 20)
    per_node = 2 * (f * 4 + 4)                # double-buffered f32 x row + batch id
    t = avail // per_node
    t = max(256, min(2048, (t // 256) * 256)) # multiple of 256 for v6e/v7x MXU
    t = min(t, _round_up(max(n, 1), 256))     # don't over-tile tiny inputs
    return int(t)


def fused_mlp_forward(x_nodes, batch, num_graphs, layer_params, *,
                      pooling="sum", node_tile=None):
    """layer_params: list of (w [Din,Dout], b [Dout]); ReLU after all but last."""
    n, f = x_nodes.shape
    num_linear = len(layer_params)
    d_out = layer_params[-1][0].shape[1]

    b_pad = max(8, _round_up(num_graphs, 8))          # sublane-aligned rows
    d_out_pad = max(128, _round_up(d_out, 128))       # lane-dense output store

    # Weights: bf16 (halves weight DMA, MXU-native), biases f32.  Final layer
    # padded to d_out_pad columns so the single output store is lane-dense.
    wb_inputs, wb_specs = [], []
    for li, (w, b) in enumerate(layer_params):
        w = w.astype(jnp.bfloat16)
        b = b.reshape(1, -1).astype(jnp.float32)
        if li == num_linear - 1 and d_out_pad != d_out:
            w = jnp.zeros((w.shape[0], d_out_pad), jnp.bfloat16).at[:, :d_out].set(w)
            b = jnp.zeros((1, d_out_pad), jnp.float32).at[:, :d_out].set(b)
        wb_inputs += [w, b]
        # Constant index_map -> DMA'd once, resident; Buffered(1) -> no useless
        # double-buffer, the saved VMEM goes into a larger node tile.
        wb_specs += [
            pl.BlockSpec(w.shape, lambda i: (0, 0), pipeline_mode=pl.Buffered(1)),
            pl.BlockSpec(b.shape, lambda i: (0, 0), pipeline_mode=pl.Buffered(1)),
        ]
    weight_bytes = sum(int(a.size) * a.dtype.itemsize for a in wb_inputs)

    if node_tile is None:
        node_tile = _auto_node_tile(n, f, weight_bytes, b_pad, d_out_pad)
    grid = (pl.cdiv(n, node_tile),)

    # No pad/cast copy of x: stream f32 as-is, cast per tile in the kernel.
    x_in = x_nodes.astype(jnp.float32)
    batch2d = batch.astype(jnp.int32).reshape(1, n)

    # Explicit VMEM limit: big enough that v5e's 16 MiB scoped default doesn't
    # shrink the tiles, capped at 64 MiB so it is valid on v7x as well.
    est_vmem = (2 * node_tile * f * 4 + 2 * node_tile * 4 + weight_bytes
                + b_pad * f * 4 + b_pad * 128 * 4 + 2 * b_pad * d_out_pad * 4)
    vmem_limit = int(min(64 << 20, max(32 << 20, 2 * est_vmem)))

    kern = functools.partial(_fused_mlp_kernel, num_linear=num_linear,
                             mean=(pooling == "mean"), n_nodes=n)
    out = pl.pallas_call(
        kern,
        out_shape=jax.ShapeDtypeStruct((b_pad, d_out_pad), jnp.float32),
        grid_spec=pltpu.PrefetchScalarGridSpec(
            num_scalar_prefetch=0,
            grid=grid,
            in_specs=[pl.BlockSpec((1, node_tile), lambda i: (0, i)),
                      pl.BlockSpec((node_tile, f), lambda i: (i, 0))] + wb_specs,
            out_specs=pl.BlockSpec((b_pad, d_out_pad), lambda i: (0, 0)),
            scratch_shapes=[pltpu.VMEM((b_pad, f), jnp.float32),
                            pltpu.VMEM((b_pad, 1), jnp.float32)]),
        # The node axis is a reduction (pooled accumulator is grid-resident).
        compiler_params=pltpu.CompilerParams(
            dimension_semantics=("arbitrary",),
            vmem_limit_bytes=vmem_limit),
    )(batch2d, x_in, *wb_inputs)
    return out[:num_graphs, :d_out]


# ----------------------------------------------------------------------------
# Parameter init (deterministic, mimics torch.nn.Linear default init)
# ----------------------------------------------------------------------------
def init_linear_params(key, d_in, d_out):
    kw, kb = jax.random.split(key)
    bound = 1.0 / (d_in ** 0.5)
    w = jax.random.uniform(kw, (d_in, d_out), jnp.float32, -bound, bound)
    b = jax.random.uniform(kb, (d_out,), jnp.float32, -bound, bound)
    return w, b


class MLP:
    def __init__(self, num_features, num_layers, hidden, num_classes,
                 num_tasks, dropout_rate, graph_pooling="sum", *, key):
        assert graph_pooling in ("sum", "mean"), "unknown pooling"
        self.num_classes = num_classes
        self.num_tasks = num_tasks
        self.dropout_rate = dropout_rate
        self.graph_pooling = graph_pooling
        self.training = False  # inference mode -> F.dropout is identity

        keys = jax.random.split(key, num_layers + 1)
        params = [init_linear_params(keys[0], num_features, hidden)]
        for i in range(num_layers - 1):
            params.append(init_linear_params(keys[i + 1], hidden, hidden))
        params.append(init_linear_params(keys[-1], hidden, num_classes * num_tasks))
        self.params = params  # hidden layers (ReLU'd) + final layer

    def __call__(self, x_nodes, batch, num_graphs):
        out = fused_mlp_forward(x_nodes, batch, num_graphs, self.params,
                                pooling=self.graph_pooling)
        # F.dropout(training=False) == identity
        if self.num_tasks == 1:
            out = out.reshape(-1, self.num_classes)
        # else: PyTorch code calls .view but discards the result (no-op).
        return out


# ----------------------------------------------------------------------------
# Reference (pure JAX) mirroring the bf16-input / f32-accumulate math.
# ----------------------------------------------------------------------------
def _reference_forward(x_nodes, batch, num_graphs, params, pooling):
    x_bf = x_nodes.astype(jnp.bfloat16).astype(jnp.float32)
    pooled = jax.ops.segment_sum(x_bf, batch, num_segments=num_graphs)
    if pooling == "mean":
        counts = jax.ops.segment_sum(jnp.ones((x_nodes.shape[0],), jnp.float32),
                                     batch, num_segments=num_graphs)
        pooled = pooled / jnp.maximum(counts, 1.0)[:, None]
    h = pooled
    for li, (w, b) in enumerate(params):
        hw = (h.astype(jnp.bfloat16).astype(jnp.float32)
              @ w.astype(jnp.bfloat16).astype(jnp.float32))
        h = hw + b
        if li < len(params) - 1:
            h = jnp.maximum(h, 0.0)
    return h


if __name__ == "__main__":
    # Small, deterministic example.
    num_features, num_layers, hidden = 16, 2, 32
    num_classes, num_tasks = 3, 1
    num_nodes, num_graphs = 300, 8

    key = jax.random.PRNGKey(0)
    k_model, k_x, k_b = jax.random.split(key, 3)

    x_nodes = jax.random.normal(k_x, (num_nodes, num_features), jnp.float32)
    # Graph assignment vector (like PyG's data.batch); need not be sorted.
    batch = jnp.sort(jax.random.randint(k_b, (num_nodes,), 0, num_graphs,
                                        dtype=jnp.int32))

    ok = True
    for pooling in ("sum", "mean"):
        model = MLP(num_features, num_layers, hidden, num_classes, num_tasks,
                    dropout_rate=0.5, graph_pooling=pooling, key=k_model)
        out = model(x_nodes, batch, num_graphs)
        jax.block_until_ready(out)

        ref = _reference_forward(x_nodes, batch, num_graphs, model.params,
                                 pooling).reshape(-1, num_classes)
        ok &= (out.shape == (num_graphs, num_classes))
        ok &= bool(jnp.allclose(out, ref, atol=2e-2, rtol=2e-2))

    assert ok
    print("KERNEL_OK")
</pallas_src>

<mosaic_0001>
module attributes {stable_mosaic.version = 11 : i64} {
  func.func @_fused_mlp_kernel(%arg0: i32, %arg1: memref<1x512xi32, #tpu.memory_space<vmem>>, %arg2: memref<512x16xf32, #tpu.memory_space<vmem>>, %arg3: memref<16x32xbf16, #tpu.memory_space<vmem>>, %arg4: memref<1x32xf32, #tpu.memory_space<vmem>>, %arg5: memref<32x32xbf16, #tpu.memory_space<vmem>>, %arg6: memref<1x32xf32, #tpu.memory_space<vmem>>, %arg7: memref<32x128xbf16, #tpu.memory_space<vmem>>, %arg8: memref<1x128xf32, #tpu.memory_space<vmem>>, %arg9: memref<8x128xf32, #tpu.memory_space<vmem>>, %arg10: memref<8x16xf32, #tpu.memory_space<vmem>>, %arg11: memref<8x1xf32, #tpu.memory_space<vmem>>) attributes {dimension_semantics = [#tpu.dimension_semantics<arbitrary>], iteration_bounds = array<i64: 1>, scalar_prefetch = 0 : i64, scratch_operands = 2 : i64, tpu.core_type = #tpu.core_type<tc>, window_params = [{transform_indices = @transform_0, window_bounds = array<i64: 1, 512>}, {transform_indices = @transform_1, window_bounds = array<i64: 512, 16>}, {pipeline_mode = #tpu.pipeline_mode<synchronous>, transform_indices = @transform_2, window_bounds = array<i64: 16, 32>}, {pipeline_mode = #tpu.pipeline_mode<synchronous>, transform_indices = @transform_3, window_bounds = array<i64: 1, 32>}, {pipeline_mode = #tpu.pipeline_mode<synchronous>, transform_indices = @transform_4, window_bounds = array<i64: 32, 32>}, {pipeline_mode = #tpu.pipeline_mode<synchronous>, transform_indices = @transform_5, window_bounds = array<i64: 1, 32>}, {pipeline_mode = #tpu.pipeline_mode<synchronous>, transform_indices = @transform_6, window_bounds = array<i64: 32, 128>}, {pipeline_mode = #tpu.pipeline_mode<synchronous>, transform_indices = @transform_7, window_bounds = array<i64: 1, 128>}, {pipeline_mode = #tpu.pipeline_mode<synchronous>, transform_indices = @transform_8, window_bounds = array<i64: 8, 128>}]} {
    %c0_i32 = arith.constant 0 : i32
    %0 = arith.cmpi eq, %arg0, %c0_i32 : i32
    %1 = arith.extui %0 : i1 to i32
    %c0_i32_0 = arith.constant 0 : i32
    %2 = arith.cmpi ne, %1, %c0_i32_0 : i32
    scf.if %2 {
      %cst_12 = arith.constant 0.000000e+00 : f32
      %36 = vector.broadcast %cst_12 : f32 to vector<8x16xf32>
      %c0_13 = arith.constant 0 : index
      %c0_14 = arith.constant 0 : index
      %37 = vector.load %arg10[%c0_13, %c0_14] : memref<8x16xf32, #tpu.memory_space<vmem>>, vector<8x16xf32>
      tpu.vector_store %arg10[%c0_13, %c0_14], %36 {strides = array<i32>} : memref<8x16xf32, #tpu.memory_space<vmem>>, vector<8x16xf32>,
      %cst_15 = arith.constant 0.000000e+00 : f32
      %38 = vector.broadcast %cst_15 : f32 to vector<8x1xf32>
      %c0_16 = arith.constant 0 : index
      %c0_17 = arith.constant 0 : index
      %39 = vector.load %arg11[%c0_16, %c0_17] : memref<8x1xf32, #tpu.memory_space<vmem>>, vector<8x1xf32>
      tpu.vector_store %arg11[%c0_16, %c0_17], %38 {strides = array<i32>} : memref<8x1xf32, #tpu.memory_space<vmem>>, vector<8x1xf32>,
    } else {
    }
    %c512_i32 = arith.constant 512 : i32
    %3 = arith.muli %arg0, %c512_i32 : i32
    %4 = tpu.iota {dimensions = array<i32: 1>} : vector<1x512xi32>
    %5 = vector.broadcast %3 : i32 to vector<1x512xi32>
    %6 = arith.addi %4, %5 : vector<1x512xi32>
    %c300_i32 = arith.constant 300 : i32
    %7 = vector.broadcast %c300_i32 : i32 to vector<1x512xi32>
    %8 = arith.cmpi slt, %6, %7 : vector<1x512xi32>
    %c0 = arith.constant 0 : index
    %c0_1 = arith.constant 0 : index
    %9 = vector.load %arg1[%c0, %c0_1] : memref<1x512xi32, #tpu.memory_space<vmem>>, vector<1x512xi32>
    %c8_i32 = arith.constant 8 : i32
    %10 = vector.broadcast %c8_i32 : i32 to vector<1x512xi32>
    %11 = arith.select %8, %9, %10 : vector<1x512xi1>, vector<1x512xi32>
    %12 = tpu.iota {dimensions = array<i32: 0>} : vector<8x512xi32>
    %13 = vector.broadcast %11 : vector<1x512xi32> to vector<8x512xi32>
    %14 = arith.cmpi eq, %12, %13 : vector<8x512xi32>
    %15 = arith.extui %14 : vector<8x512xi1> to vector<8x512xi32>
    %16 = arith.sitofp %15 : vector<8x512xi32> to vector<8x512xf32>
    %17 = arith.truncf %16 : vector<8x512xf32> to vector<8x512xbf16>
    %18 = tpu.iota {dimensions = array<i32: 0>} : vector<512x1xi32>
    %19 = vector.broadcast %3 : i32 to vector<512x1xi32>
    %20 = arith.addi %18, %19 : vector<512x1xi32>
    %c300_i32_2 = arith.constant 300 : i32
    %21 = vector.broadcast %c300_i32_2 : i32 to vector<512x1xi32>
    %22 = arith.cmpi slt, %20, %21 : vector<512x1xi32>
    %c0_3 = arith.constant 0 : index
    %c0_4 = arith.constant 0 : index
    %23 = vector.load %arg2[%c0_3, %c0_4] : memref<512x16xf32, #tpu.memory_space<vmem>>, vector<512x16xf32>
    %cst = arith.constant 0.000000e+00 : f32
    %24 = vector.shape_cast %22 : vector<512x1xi1> to vector<512x1xi1>
    %25 = vector.broadcast %24 : vector<512x1xi1> to vector<512x16xi1>
    %26 = vector.broadcast %cst : f32 to vector<512x16xf32>
    %27 = arith.select %25, %23, %26 : vector<512x16xi1>, vector<512x16xf32>
    %28 = arith.truncf %27 : vector<512x16xf32> to vector<512x16xbf16>
    %c0_5 = arith.constant 0 : index
    %c0_6 = arith.constant 0 : index
    %29 = vector.load %arg10[%c0_5, %c0_6] : memref<8x16xf32, #tpu.memory_space<vmem>>, vector<8x16xf32>
    %cst_7 = arith.constant dense<0.000000e+00> : vector<8x16xf32>
    %30 = tpu.matmul %17, %28, %cst_7 {dimension_numbers = #tpu.dot_dimension_numbers<[1], [0], [0], [1], [0, 0, 1, 1], [], []>} : vector<8x512xbf16>, vector<512x16xbf16>, vector<8x16xf32> -> vector<8x16xf32>
    %31 = arith.addf %29, %30 : vector<8x16xf32>
    %c0_8 = arith.constant 0 : index
    %c0_9 = arith.constant 0 : index
    %32 = vector.load %arg10[%c0_8, %c0_9] : memref<8x16xf32, #tpu.memory_space<vmem>>, vector<8x16xf32>
    tpu.vector_store %arg10[%c0_8, %c0_9], %31 {strides = array<i32>} : memref<8x16xf32, #tpu.memory_space<vmem>>, vector<8x16xf32>,
    %c0_i32_10 = arith.constant 0 : i32
    %33 = arith.cmpi eq, %arg0, %c0_i32_10 : i32
    %34 = arith.extui %33 : i1 to i32
    %c0_i32_11 = arith.constant 0 : i32
    %35 = arith.cmpi ne, %34, %c0_i32_11 : i32
    scf.if %35 {
      %c0_12 = arith.constant 0 : index
      %c0_13 = arith.constant 0 : index
      %36 = vector.load %arg10[%c0_12, %c0_13] : memref<8x16xf32, #tpu.memory_space<vmem>>, vector<8x16xf32>
      %37 = arith.truncf %36 : vector<8x16xf32> to vector<8x16xbf16>
      %c0_14 = arith.constant 0 : index
      %c0_15 = arith.constant 0 : index
      %38 = vector.load %arg3[%c0_14, %c0_15] : memref<16x32xbf16, #tpu.memory_space<vmem>>, vector<16x32xbf16>
      %cst_16 = arith.constant dense<0.000000e+00> : vector<8x32xf32>
      %39 = tpu.matmul %37, %38, %cst_16 {dimension_numbers = #tpu.dot_dimension_numbers<[1], [0], [0], [1], [0, 0, 1, 1], [], []>} : vector<8x16xbf16>, vector<16x32xbf16>, vector<8x32xf32> -> vector<8x32xf32>
      %c0_17 = arith.constant 0 : index
      %c0_18 = arith.constant 0 : index
      %40 = vector.load %arg4[%c0_17, %c0_18] : memref<1x32xf32, #tpu.memory_space<vmem>>, vector<1x32xf32>
      %41 = vector.broadcast %40 : vector<1x32xf32> to vector<8x32xf32>
      %42 = arith.addf %39, %41 : vector<8x32xf32>
      %cst_19 = arith.constant 0.000000e+00 : f32
      %43 = vector.broadcast %cst_19 : f32 to vector<8x32xf32>
      %44 = arith.maximumf %42, %43 : vector<8x32xf32>
      %45 = arith.truncf %44 : vector<8x32xf32> to vector<8x32xbf16>
      %c0_20 = arith.constant 0 : index
      %c0_21 = arith.constant 0 : index
      %46 = vector.load %arg5[%c0_20, %c0_21] : memref<32x32xbf16, #tpu.memory_space<vmem>>, vector<32x32xbf16>
      %cst_22 = arith.constant dense<0.000000e+00> : vector<8x32xf32>
      %47 = tpu.matmul %45, %46, %cst_22 {dimension_numbers = #tpu.dot_dimension_numbers<[1], [0], [0], [1], [0, 0, 1, 1], [], []>} : vector<8x32xbf16>, vector<32x32xbf16>, vector<8x32xf32> -> vector<8x32xf32>
      %c0_23 = arith.constant 0 : index
      %c0_24 = arith.constant 0 : index
      %48 = vector.load %arg6[%c0_23, %c0_24] : memref<1x32xf32, #tpu.memory_space<vmem>>, vector<1x32xf32>
      %49 = vector.broadcast %48 : vector<1x32xf32> to vector<8x32xf32>
      %50 = arith.addf %47, %49 : vector<8x32xf32>
      %cst_25 = arith.constant 0.000000e+00 : f32
      %51 = vector.broadcast %cst_25 : f32 to vector<8x32xf32>
      %52 = arith.maximumf %50, %51 : vector<8x32xf32>
      %53 = arith.truncf %52 : vector<8x32xf32> to vector<8x32xbf16>
      %c0_26 = arith.constant 0 : index
      %c0_27 = arith.constant 0 : index
      %54 = vector.load %arg7[%c0_26, %c0_27] : memref<32x128xbf16, #tpu.memory_space<vmem>>, vector<32x128xbf16>
      %cst_28 = arith.constant dense<0.000000e+00> : vector<8x128xf32>
      %55 = tpu.matmul %53, %54, %cst_28 {dimension_numbers = #tpu.dot_dimension_numbers<[1], [0], [0], [1], [0, 0, 1, 1], [], []>} : vector<8x32xbf16>, vector<32x128xbf16>, vector<8x128xf32> -> vector<8x128xf32>
      %c0_29 = arith.constant 0 : index
      %c0_30 = arith.constant 0 : index
      %56 = vector.load %arg8[%c0_29, %c0_30] : memref<1x128xf32, #tpu.memory_space<vmem>>, vector<1x128xf32>
      %57 = vector.broadcast %56 : vector<1x128xf32> to vector<8x128xf32>
      %58 = arith.addf %55, %57 : vector<8x128xf32>
      %c0_31 = arith.constant 0 : index
      %c0_32 = arith.constant 0 : index
      %59 = vector.load %arg9[%c0_31, %c0_32] : memref<8x128xf32, #tpu.memory_space<vmem>>, vector<8x128xf32>
      tpu.vector_store %arg9[%c0_31, %c0_32], %58 {strides = array<i32>} : memref<8x128xf32, #tpu.memory_space<vmem>>, vector<8x128xf32>,
    } else {
    }
    return
  }
  func.func @transform_0(%arg0: i32) -> (i32, i32) {
    %c0_i32 = arith.constant 0 : i32
    %c0_i32_0 = arith.constant 0 : i32
    return %c0_i32, %arg0 : i32, i32
  }
  func.func @transform_1(%arg0: i32) -> (i32, i32) {
    %c0_i32 = arith.constant 0 : i32
    %c0_i32_0 = arith.constant 0 : i32
    return %arg0, %c0_i32 : i32, i32
  }
  func.func @transform_2(%arg0: i32) -> (i32, i32) {
    %c0_i32 = arith.constant 0 : i32
    %c0_i32_0 = arith.constant 0 : i32
    %c0_i32_1 = arith.constant 0 : i32
    return %c0_i32, %c0_i32_0 : i32, i32
  }
  func.func @transform_3(%arg0: i32) -> (i32, i32) {
    %c0_i32 = arith.constant 0 : i32
    %c0_i32_0 = arith.constant 0 : i32
    %c0_i32_1 = arith.constant 0 : i32
    return %c0_i32, %c0_i32_0 : i32, i32
  }
  func.func @transform_4(%arg0: i32) -> (i32, i32) {
    %c0_i32 = arith.constant 0 : i32
    %c0_i32_0 = arith.constant 0 : i32
    %c0_i32_1 = arith.constant 0 : i32
    return %c0_i32, %c0_i32_0 : i32, i32
  }
  func.func @transform_5(%arg0: i32) -> (i32, i32) {
    %c0_i32 = arith.constant 0 : i32
    %c0_i32_0 = arith.constant 0 : i32
    %c0_i32_1 = arith.constant 0 : i32
    return %c0_i32, %c0_i32_0 : i32, i32
  }
  func.func @transform_6(%arg0: i32) -> (i32, i32) {
    %c0_i32 = arith.constant 0 : i32
    %c0_i32_0 = arith.constant 0 : i32
    %c0_i32_1 = arith.constant 0 : i32
    return %c0_i32, %c0_i32_0 : i32, i32
  }
  func.func @transform_7(%arg0: i32) -> (i32, i32) {
    %c0_i32 = arith.constant 0 : i32
    %c0_i32_0 = arith.constant 0 : i32
    %c0_i32_1 = arith.constant 0 : i32
    return %c0_i32, %c0_i32_0 : i32, i32
  }
  func.func @transform_8(%arg0: i32) -> (i32, i32) {
    %c0_i32 = arith.constant 0 : i32
    %c0_i32_0 = arith.constant 0 : i32
    %c0_i32_1 = arith.constant 0 : i32
    return %c0_i32, %c0_i32_0 : i32, i32
  }
}

</mosaic_0001>

<bundles_post_ra>
// kernel: tpu_custom_call.1
= control target key start
LH: loop header
LB: loop body
LE: loop exit
PB: predicated region body
PF: predicated region fallthrough
CT: control target
= control target key end

     0   :  { %v40_v3 = vlaneseq  ;;  %v825_v8 = vmov 0.0|0.0   ;;  %v826_v16 = vmov 8   ;;  %vm827_vm1 = vmmov 1   ;;  %s1030_s0 = inlined_call_operand.vmem [shape: s32[1,300], index: 0, kind: input, shape index: {}]   ;;  %s1031_s1 = inlined_call_operand.vmem [shape: f32[300,16], index: 1, kind: input, shape index: {}]   ;;  %s1032_s2 = inlined_call_operand.vmem [shape: bf16[16,32], index: 2, kind: input, shape index: {}]   ;;  %s1033_s3 = inlined_call_operand.vmem [shape: f32[1,32], index: 3, kind: input, shape index: {}]   ;;  %s1034_s4 = inlined_call_operand.vmem [shape: bf16[32,32], index: 4, kind: input, shape index: {}]   ;;  %s1035_s5 = inlined_call_operand.vmem [shape: f32[1,32], index: 5, kind: input, shape index: {}]   ;;  %s1036_s6 = inlined_call_operand.vmem [shape: bf16[32,128], index: 6, kind: input, shape index: {}]   ;;  %s1037_s7 = inlined_call_operand.vmem [shape: f32[1,128], index: 7, kind: input, shape index: {}]   ;;  %s1038_s8 = inlined_call_operand.hbm [shape: f32[8,128], index: 8, kind: output, shape index: {}]  }
   0x1   :  { %v290_v0 = vld [vmem:[%s1031_s1 + $0x70] sm:$0xff]  ;;  %v291_v1 = vld [vmem:[%s1031_s1 + $0x78] sm:$0xff]  ;;  %v288_v6 = vld [vmem:[%s1031_s1 + $0x60] sm:$0xff]  ;;  %611 = vmatpush.bf16.msra.mxu3 %v825_v8  ;;  %v68_v17 = vperm.slane %v826_v16, 0  ;;  %v828_v41 = vmov 1.0|1.0  }
   0x2   :  { %v306_v2 = vld [vmem:[%s1031_s1 + $0xf0] sm:$0xff]  ;;  %v539_v4 = vpack.c.bf16 %v291_v1, %v290_v0  ;;  %v307_v5 = vld [vmem:[%s1031_s1 + $0xf8] sm:$0xff]  ;;  %v289_v7 = vld [vmem:[%s1031_s1 + $0x68] sm:$0xff]  ;;  %v900_v12 = vshrl.u32 %v40_v3, 7  ;;  %v41_v13 = vand.u32 127, %v40_v3 }
   0x3   :  { %v547_v9 = vpack.c.bf16 %v307_v5, %v306_v2  ;;  %v304_v10 = vld [vmem:[%s1031_s1 + $0xe0] sm:$0xff]  ;;  %v305_v11 = vld [vmem:[%s1031_s1 + $0xe8] sm:$0xff]  ;;  %v538_v14 = vpack.c.bf16 %v289_v7, %v288_v6  ;;  %v286_v15 = vld [vmem:[%s1031_s1 + $0x50] sm:$0xff] }
   0x4   :  { %565 = vmatpush.bf16.msra.mxu0 %v539_v4  ;;  %v546_v18 = vpack.c.bf16 %v305_v11, %v304_v10  ;;  %v287_v19 = vld [vmem:[%s1031_s1 + $0x58] sm:$0xff]  ;;  %v121_v20 = vadd.s32 296, %v900_v12  ;;  %v312_v21 = vld [vmem:[%s1031_s1 + $0x120] sm:$0xff]  ;;  %v313_v22 = vld [vmem:[%s1031_s1 + $0x128] sm:$0xff]  ;;  %v43_v26 = vadd.s32 256, %v41_v13  ;;  %vm72_vm3 = vcmp.eq.s32.totalorder %v900_v12, %v68_v17 }
   0x5   :  { %578 = vmatpush.bf16.msra.mxu1 %v547_v9  ;;  %v302_v23 = vld [vmem:[%s1031_s1 + $0xd0] sm:$0xff]  ;;  %v303_v24 = vld [vmem:[%s1031_s1 + $0xd8] sm:$0xff]  ;;  %v756_v25 = vpack.c.bf16 %v313_v22, %v312_v21  ;;  %v537_v29 = vpack.c.bf16 %v287_v19, %v286_v15  ;;  %v284_v30 = vld [vmem:[%s1031_s1 + $0x40] sm:$0xff] }
   0x6   :  { %vm249_vm0 = vcmp.lt.s32.totalorder %v121_v20, 300  ;;  %v310_v27 = vld [vmem:[%s1031_s1 + $0x110] sm:$0xff]  ;;  %v311_v28 = vld [vmem:[%s1031_s1 + $0x118] sm:$0xff]  ;;  %v545_v31 = vpack.c.bf16 %v303_v24, %v302_v23  ;;  %v285_v32 = vld [vmem:[%s1031_s1 + $0x48] sm:$0xff]  ;;  %vm52_vm4 = vcmp.lt.s32.totalorder %v43_v26, 300 }
   0x7   :  { %vm755_vm2 = vmpackc.low %vm249_vm0, %vm827_vm1  ;;  %v300_v33 = vld [vmem:[%s1031_s1 + $0xc0] sm:$0xff]  ;;  %v301_v34 = vld [vmem:[%s1031_s1 + $0xc8] sm:$0xff]  ;;  %v549_v35 = vpack.c.bf16 %v311_v28, %v310_v27  ;;  %v536_v40 = vpack.c.bf16 %v285_v32, %v284_v30 }
   0x8   :  { %566 = vmatpush.bf16.msra.mxu0 %v538_v14  ;;  %757 = vmatpush.bf16.msk.msra.mxu2 %vm755_vm2, %v756_v25  ;;  %v308_v36 = vld [vmem:[%s1031_s1 + $0x100] sm:$0xff]  ;;  %v309_v37 = vld [vmem:[%s1031_s1 + $0x108] sm:$0xff]  ;;  %vm760_vm5 = vmpackc.low %vm72_vm3, %vm72_vm3  ;;  %v544_v42 = vpack.c.bf16 %v301_v34, %v300_v33 }
   0x9   :  { %579 = vmatpush.bf16.msra.mxu1 %v546_v18  ;;  %v54_v38 = vld [vmem:[%s1030_s0] sm:$0xf]  ;;  %761 = vmatmul.msk.bf16.vlgmr.msra.gmra.mxu3 %vm760_vm5, %v828_v41  ;;  %v282_v43 = vld [vmem:[%s1031_s1 + $0x30] sm:$0xff]  ;;  %v283_v44 = vld [vmem:[%s1031_s1 + $0x38] sm:$0xff]  ;;  %v548_v45 = vpack.c.bf16 %v309_v37, %v308_v36 }
   0xa   :  { %v57_v39 = vperm.slane %v54_v38, 2  ;;  %v298_v47 = vld [vmem:[%s1031_s1 + $0xb0] sm:$0xff]  ;;  %v299_v48 = vld [vmem:[%s1031_s1 + $0xb8] sm:$0xff] }
   0xc   :  { %567 = vmatpush.bf16.msra.mxu0 %v537_v29  ;;  %597 = vmatpush.bf16.msra.mxu2 %v549_v35  ;;  %v61_v46 = vsel %vm52_vm4, %v57_v39, 8 }
   0xd   :  { %580 = vmatpush.bf16.msra.mxu1 %v545_v31  ;;  %v67_v49 = vperm.slane %v61_v46, 0 }
   0xe   :  { %13 = vsyncpa [#allocation5], 0  ;;  %v535_v50 = vpack.c.bf16 %v283_v44, %v282_v43  ;;  %v543_v51 = vpack.c.bf16 %v299_v48, %v298_v47  ;;  %v280_v52 = vld [vmem:[%s1031_s1 + $0x20] sm:$0xff]  ;;  %v281_v53 = vld [vmem:[%s1031_s1 + $0x28] sm:$0xff]  ;;  %v55_v60 = vperm.slane %v54_v38, 0  ;;  %v56_v63 = vperm.slane %v54_v38, 1 }
   0xf   :  { %vm71_vm6 = vcmp.eq.s32.totalorder %v900_v12, %v67_v49  ;;  %v296_v54 = vld [vmem:[%s1031_s1 + $0xa0] sm:$0xff]  ;;  %v297_v55 = vld [vmem:[%s1031_s1 + $0xa8] sm:$0xff]  ;;  %v534_v56 = vpack.c.bf16 %v281_v53, %v280_v52  ;;  %v278_v58 = vld [vmem:[%s1031_s1 + $0x10] sm:$0xff]  ;;  %vm35_vm12 = vcmask 130048   ;;  %v829_v10 = vmov 0.0   ;;  %s738_s30 = sshll.u32 %s1038_s8, 4  ;;  %s739_s30 = int_to_ptr.hbm [resolvable:$true] %s738_s30 }
  0x10   :  { %568 = vmatpush.bf16.msra.mxu0 %v536_v40  ;;  %598 = vmatpush.bf16.msra.mxu2 %v548_v45  ;;  %vm758_vm7 = vmpackc.low %vm71_vm6, %vm71_vm6  ;;  %v542_v57 = vpack.c.bf16 %v297_v55, %v296_v54  ;;  %v279_v59 = vld [vmem:[%s1031_s1 + $0x18] sm:$0xff]  ;;  %v294_v61 = vld [vmem:[%s1031_s1 + $0x90] sm:$0xff]  ;;  %v65_v4 = vperm.slane %v55_v60, 0  ;;  %v66_v7 = vperm.slane %v56_v63, 0  ;;  %36 = vst.msk [vmem:[#allocation2] sm:$0xff] %vm35_vm12, %v829_v10  ;;  %vm675_vm13 = vcmask 261120  }
  0x11   :  { %581 = vmatpush.bf16.msra.mxu1 %v544_v42  ;;  %v295_v62 = vld [vmem:[%s1031_s1 + $0x98] sm:$0xff]  ;;  %v533_v0 = vpack.c.bf16 %v279_v59, %v278_v58  ;;  %v276_v2 = vld [vmem:[%s1031_s1] sm:$0xff]  ;;  %v277_v3 = vld [vmem:[%s1031_s1 + $0x8] sm:$0xff] }
  0x12   :  { %v541_v1 = vpack.c.bf16 %v295_v62, %v294_v61  ;;  %v292_v5 = vld [vmem:[%s1031_s1 + $0x80] sm:$0xff]  ;;  %v293_v6 = vld [vmem:[%s1031_s1 + $0x88] sm:$0xff]  ;;  %v532_v8 = vpack.c.bf16 %v277_v3, %v276_v2  ;;  %vm69_vm8 = vcmp.eq.s32.totalorder %v900_v12, %v65_v4  ;;  %vm70_vm9 = vcmp.eq.s32.totalorder %v900_v12, %v66_v7 }
  0x13   :  { %759 = vmatmul.msk.bf16.vlgmr.msra.gmra.mxu2 %vm758_vm7, %v828_v41  ;;  %v540_v9 = vpack.c.bf16 %v293_v6, %v292_v5  ;;  %vm751_vm10 = vmpackc.low %vm69_vm8, %vm69_vm8  ;;  %v785_v11 = vld [vmem:[%s1032_s2] sm:$0xff]  ;;  %v787_v12 = vld [vmem:[%s1034_s4 + $0x8] sm:$0xff] }
  0x14   :  { %569 = vmatpush.bf16.msra.mxu0 %v535_v50  ;;  %vm753_vm11 = vmpackc.low %vm70_vm9, %vm70_vm9  ;;  %647 = vmatpush.bf16.msrb.mxu3 %v785_v11  ;;  %v786_v14 = vld [vmem:[%s1034_s4] sm:$0xff]  ;;  %v789_v29 = vld [vmem:[%s1036_s6 + $0x8] sm:$0xff] }
  0x15   :  { %582 = vmatpush.bf16.msra.mxu1 %v543_v51  ;;  %685 = vmatpush.bf16.msrb.mxu2 %v787_v12  ;;  %v788_v30 = vld [vmem:[%s1036_s6] sm:$0xff] }
  0x16   :  { %v796_v31 = vld [vmem:[%s1033_s3] ss:$0 sm:$0xff]  ;;  %s830_s3 = smov [#allocation4]  }
  0x17   :  { %v564_v22 = vld [vmem:[#allocation2] sm:$0xff]  ;;  %s736_s27 = sshll.u32 %s830_s3, 4  ;;  %s737_s27 = int_to_ptr.vmem [resolvable:$true] %s736_s27 }
  0x18   :  { %570 = vmatpush.bf16.msra.mxu0 %v534_v56  ;;  %723 = vmatpush.bf16.msra.mxu3 %v789_v29  ;;  %v797_v37 = vld [vmem:[%s1035_s5] ss:$0 sm:$0xff] }
  0x19   :  { %583 = vmatpush.bf16.msra.mxu1 %v542_v57  ;;  %686 = vmatpush.bf16.msrb.mxu2 %v786_v14  ;;  %v798_v43 = vld [vmem:[%s1037_s7] ss:$0 sm:$0xff] }
  0x1c   :  { %571 = vmatpush.bf16.msra.mxu0 %v533_v0  ;;  %724 = vmatpush.bf16.msra.mxu3 %v788_v30 }
  0x1d   :  { %584 = vmatpush.bf16.msra.mxu1 %v541_v1 }
  0x20   :  { %572 = vmatpush.bf16.msra.mxu0 %v532_v8 }
  0x21   :  { %585 = vmatpush.bf16.msra.mxu1 %v540_v9 }
  0x23   :  { %752 = vmatmul.msk.bf16.vlgmr.msra.gmra.mxu0 %vm751_vm10, %v828_v41 }
  0x24   :  { %754 = vmatmul.msk.bf16.vlgmr.msra.gmra.mxu1 %vm753_vm11, %v828_v41 }
  0x8c   :  { %v613_v13 = vpop.f32.mrf.mxu3 }
  0x94   :  { %v615_v16 = vpop.f32.mrf.mxu3 }
  0x96   :  { %v600_v15 = vpop.f32.mrf.mxu2 }
  0x9e   :  { %v602_v17 = vpop.f32.mrf.mxu2 }
  0xa0   :  { %v574_v18 = vpop.f32.mrf.mxu0 }
  0xa1   :  { %v587_v19 = vpop.f32.mrf.mxu1 }
  0xa2   :  { %v588_v20 = vadd.f32 %v587_v19, %v574_v18 }
  0xa4   :  { %v601_v21 = vadd.f32 %v600_v15, %v588_v20 }
  0xa6   :  { %v614_v23 = vadd.f32 %v613_v13, %v601_v21 }
  0xa8   :  { %v576_v24 = vpop.f32.mrf.mxu0  ;;  %v617_v25 = vadd.f32 %v614_v23, %v564_v22 }
  0xa9   :  { %v589_v26 = vpop.f32.mrf.mxu1 }
  0xaa   :  { %619 = vst.msk [vmem:[#allocation2] sm:$0xff] %vm35_vm12, %v617_v25 }
  0xb1   :  { %v623_v27 = vld [vmem:[#allocation2] sm:$0xff] }
  0xb2   :  { %v624_v28 = vpack.c.bf16 %v623_v27, %v623_v27 }
  0xb4   :  { %766 = vmatmul.msk.bf16.vlgmr.msrb.gmra.mxu3 %vm35_vm12, %v624_v28 }
 0x137   :  { %v649_v32 = vpop.f32.mrf.mxu3 }
 0x138   :  { %v650_v33 = vadd.f32 %v796_v31, %v649_v32 }
 0x13a   :  { %v653_v34 = vmax.f32 %v650_v33, 0.0 }
 0x13c   :  { %v654_v35 = vpack.c.bf16 %v653_v34, %v653_v34 }
 0x13e   :  { %775 = vmatmul.msk.bf16.vlgmr.msrb.gmra.mxu2 %vm675_vm13, %v654_v35 }
 0x13f   :  { %v651_v36 = vpop.f32.mrf.mxu3 }
 0x1c1   :  { %v688_v38 = vpop.f32.mrf.mxu2 }
 0x1c2   :  { %v689_v39 = vadd.f32 %v797_v37, %v688_v38 }
 0x1c4   :  { %v692_v40 = vmax.f32 %v689_v39, 0.0 }
 0x1c6   :  { %v693_v41 = vpack.c.bf16 %v692_v40, %v692_v40 }
 0x1c8   :  { %784 = vmatmul.msk.bf16.vlgmr.msra.gmra.mxu3 %vm675_vm13, %v693_v41 }
 0x1c9   :  { %v690_v42 = vpop.f32.mrf.mxu2 }
 0x24b   :  { %v726_v44 = vpop.f32.mrf.mxu3 }
 0x24c   :  { %v727_v45 = vadd.f32 %v798_v43, %v726_v44 }
 0x24e   :  { %730 = vst [vmem:[#allocation4] sm:$0xff] %v727_v45 }
 0x24f   :  { %741 = dma.vmem_to_hbm [thread:$0]  %s737_s27, 128, %s739_s30, [#allocation5]  }
 0x253   :  { %v728_v46 = vpop.f32.mrf.mxu3 }
 0x254   :  { %823 = dma.done.wait [#allocation5], 128  }
 0x255   :  { %824 = vsyncadd [#allocation5], 4294967168 }
 0x256   :  { %746 = vsyncpa [#allocation5], 1 }

</bundles_post_ra>
